<compile_context>
chip_gen: v7x
topology: tpu7x:2x2x1
jax: 0.10.0
libtpu: 0.0.40
codegen_flags: <defaults>
</compile_context>

<pallas_src>
import jax
import jax.numpy as jnp
from jax.experimental import pallas as pl
from jax.experimental.pallas import tpu as pltpu


def encoder_lstm_kernel(maxlen_ref, len_ref, x_ref, wih_ref, whh_ref, b_ref,
                        out_ref, h_ref, c_ref,
                        gx_i, gx_f, gx_g, gx_o, h_sc, c_sc):
    TB, H = x_ref.shape
    B = len_ref.shape[0]

    # ---- init: output zeroed once (timesteps past max(length) are skipped) --
    out_ref[...] = jnp.zeros_like(out_ref)
    h_sc[...] = jnp.zeros_like(h_sc)
    c_sc[...] = jnp.zeros_like(c_sc)

    # ---- hoisted input projection: one (T*B, H) @ (H, H) MXU matmul per gate,
    #      bias folded in here (not re-broadcast every timestep). -------------
    x = x_ref[...]
    gx_i[...] = jnp.dot(x, wih_ref[0], preferred_element_type=jnp.float32) + b_ref[0]
    gx_f[...] = jnp.dot(x, wih_ref[1], preferred_element_type=jnp.float32) + b_ref[1]
    gx_g[...] = jnp.dot(x, wih_ref[2], preferred_element_type=jnp.float32) + b_ref[2]
    gx_o[...] = jnp.dot(x, wih_ref[3], preferred_element_type=jnp.float32) + b_ref[3]

    lens = len_ref[...]                 # (B, 1) int32, loaded once
    n_steps = maxlen_ref[0]             # SMEM scalar: skip all-padding tail steps

    def step(t, carry):
        off = pl.multiple_of(t * B, B)  # sublane-aligned (B padded to mult. of 8)
        h_prev = h_sc[...]
        c_prev = c_sc[...]

        # Recurrent projection, one (B, H) @ (H, H) dot per gate: each gate
        # result is already its own lane-aligned tile (no intra-vreg slicing).
        i_g = jax.nn.sigmoid(
            gx_i[pl.ds(off, B), :]
            + jnp.dot(h_prev, whh_ref[0], preferred_element_type=jnp.float32))
        f_g = jax.nn.sigmoid(
            gx_f[pl.ds(off, B), :]
            + jnp.dot(h_prev, whh_ref[1], preferred_element_type=jnp.float32))
        g_g = jnp.tanh(
            gx_g[pl.ds(off, B), :]
            + jnp.dot(h_prev, whh_ref[2], preferred_element_type=jnp.float32))
        o_g = jax.nn.sigmoid(
            gx_o[pl.ds(off, B), :]
            + jnp.dot(h_prev, whh_ref[3], preferred_element_type=jnp.float32))

        c_new = f_g * c_prev + i_g * g_g
        h_new = o_g * jnp.tanh(c_new)

        # packed-sequence semantics: freeze state past each row's length
        valid = t < lens                                   # (B, 1) bool
        h_sc[...] = jnp.where(valid, h_new, h_prev)
        c_sc[...] = jnp.where(valid, c_new, c_prev)
        out_ref[t, :, :] = jnp.where(valid, h_new, 0.0)    # padded out: zeros
        return carry

    jax.lax.fori_loop(0, n_steps, step, 0)

    h_ref[0, :, :] = h_sc[...]
    c_ref[0, :, :] = c_sc[...]


def encoder_forward(seq, lengths, params):
    """seq: (B, T) int32; lengths: (B,) int32. Returns (out_padded, h, c)."""
    B, T = seq.shape
    emb = params["emb"]                 # (V, H); row 0 is zero (padding_idx=0)
    H = emb.shape[1]

    # pad batch to the f32 sublane granularity (8); padded rows get length 0
    B_pad = max(8, -(-B // 8) * 8)
    seq_p = jnp.pad(seq.astype(jnp.int32), ((0, B_pad - B), (0, 0)))
    len_p = jnp.pad(lengths.astype(jnp.int32), (0, B_pad - B))

    # Embedding lookup as an XLA gather: the table stays in HBM, only the
    # (T, B, H) activations enter VMEM.  Row 0 of the table is zero, so padded
    # tokens (id 0) embed to zero.  Gathering through seq.T yields time-major
    # activations directly (transpose only touches the tiny int32 index array).
    x_tm = emb[seq_p.T].reshape(T * B_pad, H)              # (T*B, H) f32

    # per-gate weight layout (gate, H_in, H_out); PyTorch gate order i, f, g, o
    wih_g = params["w_ih"].reshape(4, H, H).transpose(0, 2, 1)
    whh_g = params["w_hh"].reshape(4, H, H).transpose(0, 2, 1)
    bias_g = (params["b_ih"] + params["b_hh"]).reshape(4, 1, H)

    max_len = jnp.minimum(jnp.max(len_p), T).astype(jnp.int32).reshape(1)

    vmem = pl.BlockSpec(memory_space=pltpu.MemorySpace.VMEM)
    smem = pl.BlockSpec(memory_space=pltpu.MemorySpace.SMEM)

    # explicit VMEM budget (default scoped limit is only 16/32 MiB)
    resident_bytes = 4 * (5 * T * B_pad * H        # x + 4 per-gate projections
                          + 8 * H * H + 4 * H      # weights + bias
                          + T * B_pad * H          # out
                          + 4 * B_pad * H)         # h/c outputs + h/c scratch
    vmem_limit = None
    if resident_bytes > 12 * (1 << 20):
        vmem_limit = int(min(2 * resident_bytes, 48 * (1 << 20)))

    out_tm, h, c = pl.pallas_call(
        encoder_lstm_kernel,
        out_shape=(
            jax.ShapeDtypeStruct((T, B_pad, H), jnp.float32),   # out (time-major)
            jax.ShapeDtypeStruct((1, B_pad, H), jnp.float32),   # h_n
            jax.ShapeDtypeStruct((1, B_pad, H), jnp.float32),   # c_n
        ),
        in_specs=[smem, vmem, vmem, vmem, vmem, vmem],
        out_specs=(vmem, vmem, vmem),
        scratch_shapes=[
            pltpu.VMEM((T * B_pad, H), jnp.float32),   # gx_i
            pltpu.VMEM((T * B_pad, H), jnp.float32),   # gx_f
            pltpu.VMEM((T * B_pad, H), jnp.float32),   # gx_g
            pltpu.VMEM((T * B_pad, H), jnp.float32),   # gx_o
            pltpu.VMEM((B_pad, H), jnp.float32),       # h state
            pltpu.VMEM((B_pad, H), jnp.float32),       # c state
        ],
        compiler_params=pltpu.CompilerParams(vmem_limit_bytes=vmem_limit),
    )(max_len, len_p.reshape(B_pad, 1), x_tm, wih_g, whh_g, bias_g)

    out = jnp.transpose(out_tm, (1, 0, 2))[:B]   # (B, T, H) batch-first
    return out, h[:, :B], c[:, :B]


def _reference_forward(seq, lengths, params):
    """Pure-JAX reference of the same recurrence (for verification)."""
    B, T = seq.shape
    emb = params["emb"]
    H = emb.shape[1]
    wih_t, whh_t = params["w_ih"].T, params["w_hh"].T
    bias = params["b_ih"] + params["b_hh"]

    x = emb[seq]                                  # (B, T, H)

    def cell(carry, t):
        h_prev, c_prev = carry
        x_t = x[:, t, :]
        gates = x_t @ wih_t + h_prev @ whh_t + bias
        i_g = jax.nn.sigmoid(gates[:, 0 * H:1 * H])
        f_g = jax.nn.sigmoid(gates[:, 1 * H:2 * H])
        g_g = jnp.tanh(gates[:, 2 * H:3 * H])
        o_g = jax.nn.sigmoid(gates[:, 3 * H:4 * H])
        c_new = f_g * c_prev + i_g * g_g
        h_new = o_g * jnp.tanh(c_new)
        valid = (t < lengths)[:, None].astype(jnp.float32)
        h_out = valid * h_new + (1 - valid) * h_prev
        c_out = valid * c_new + (1 - valid) * c_prev
        return (h_out, c_out), valid * h_new

    init = (jnp.zeros((B, H), jnp.float32), jnp.zeros((B, H), jnp.float32))
    (h, c), outs = jax.lax.scan(cell, init, jnp.arange(T))
    return jnp.transpose(outs, (1, 0, 2)), h[None], c[None]


def init_params(key, vocab_size, hidden_dim):
    k1, k2, k3, k4, k5 = jax.random.split(key, 5)
    bound = 1.0 / jnp.sqrt(hidden_dim)
    emb = jax.random.normal(k1, (vocab_size, hidden_dim), jnp.float32)
    emb = emb.at[0].set(0.0)  # padding_idx=0
    params = {
        "emb": emb,
        "w_ih": jax.random.uniform(k2, (4 * hidden_dim, hidden_dim),
                                   jnp.float32, -bound, bound),
        "w_hh": jax.random.uniform(k3, (4 * hidden_dim, hidden_dim),
                                   jnp.float32, -bound, bound),
        "b_ih": jax.random.uniform(k4, (4 * hidden_dim,),
                                   jnp.float32, -bound, bound),
        "b_hh": jax.random.uniform(k5, (4 * hidden_dim,),
                                   jnp.float32, -bound, bound),
    }
    return params


if __name__ == "__main__":
    VOCAB, HIDDEN = 32, 32
    B, T = 4, 8

    key = jax.random.PRNGKey(0)
    pkey, skey = jax.random.split(key)
    params = init_params(pkey, VOCAB, HIDDEN)

    lengths = jnp.array([8, 5, 3, 1], dtype=jnp.int32)
    seq = jax.random.randint(skey, (B, T), 1, VOCAB, dtype=jnp.int32)
    # zero out padded positions (as a real padded batch would have)
    t_idx = jnp.arange(T)[None, :]
    seq = jnp.where(t_idx < lengths[:, None], seq, 0).astype(jnp.int32)

    out, h, c = encoder_forward(seq, lengths, params)
    jax.block_until_ready((out, h, c))

    ref_out, ref_h, ref_c = _reference_forward(seq, lengths, params)
    assert jnp.allclose(out, ref_out, atol=1e-5, rtol=1e-5)
    assert jnp.allclose(h, ref_h, atol=1e-5, rtol=1e-5)
    assert jnp.allclose(c, ref_c, atol=1e-5, rtol=1e-5)

    print("KERNEL_OK")
</pallas_src>

<mosaic_0001>
module attributes {stable_mosaic.version = 11 : i64} {
  func.func @encoder_lstm_kernel(%arg0: memref<1xi32, #tpu.memory_space<smem>>, %arg1: memref<8x1xi32, #tpu.memory_space<vmem>>, %arg2: memref<64x32xf32, #tpu.memory_space<vmem>>, %arg3: memref<4x32x32xf32, #tpu.memory_space<vmem>>, %arg4: memref<4x32x32xf32, #tpu.memory_space<vmem>>, %arg5: memref<4x1x32xf32, #tpu.memory_space<vmem>>, %arg6: memref<8x8x32xf32, #tpu.memory_space<vmem>>, %arg7: memref<1x8x32xf32, #tpu.memory_space<vmem>>, %arg8: memref<1x8x32xf32, #tpu.memory_space<vmem>>, %arg9: memref<64x32xf32, #tpu.memory_space<vmem>>, %arg10: memref<64x32xf32, #tpu.memory_space<vmem>>, %arg11: memref<64x32xf32, #tpu.memory_space<vmem>>, %arg12: memref<64x32xf32, #tpu.memory_space<vmem>>, %arg13: memref<8x32xf32, #tpu.memory_space<vmem>>, %arg14: memref<8x32xf32, #tpu.memory_space<vmem>>) attributes {dimension_semantics = [], scalar_prefetch = 0 : i64, scratch_operands = 6 : i64, tpu.core_type = #tpu.core_type<tc>} {
    %cst = arith.constant 0.000000e+00 : f32
    %0 = vector.broadcast %cst : f32 to vector<8x8x32xf32>
    %c0 = arith.constant 0 : index
    %c0_0 = arith.constant 0 : index
    %c0_1 = arith.constant 0 : index
    %1 = vector.load %arg6[%c0, %c0_0, %c0_1] : memref<8x8x32xf32, #tpu.memory_space<vmem>>, vector<8x8x32xf32>
    tpu.vector_store %arg6[%c0, %c0_0, %c0_1], %0 {strides = array<i32>} : memref<8x8x32xf32, #tpu.memory_space<vmem>>, vector<8x8x32xf32>,
    %cst_2 = arith.constant 0.000000e+00 : f32
    %2 = vector.broadcast %cst_2 : f32 to vector<8x32xf32>
    %c0_3 = arith.constant 0 : index
    %c0_4 = arith.constant 0 : index
    %3 = vector.load %arg13[%c0_3, %c0_4] : memref<8x32xf32, #tpu.memory_space<vmem>>, vector<8x32xf32>
    tpu.vector_store %arg13[%c0_3, %c0_4], %2 {strides = array<i32>} : memref<8x32xf32, #tpu.memory_space<vmem>>, vector<8x32xf32>,
    %cst_5 = arith.constant 0.000000e+00 : f32
    %4 = vector.broadcast %cst_5 : f32 to vector<8x32xf32>
    %c0_6 = arith.constant 0 : index
    %c0_7 = arith.constant 0 : index
    %5 = vector.load %arg14[%c0_6, %c0_7] : memref<8x32xf32, #tpu.memory_space<vmem>>, vector<8x32xf32>
    tpu.vector_store %arg14[%c0_6, %c0_7], %4 {strides = array<i32>} : memref<8x32xf32, #tpu.memory_space<vmem>>, vector<8x32xf32>,
    %c0_8 = arith.constant 0 : index
    %c0_9 = arith.constant 0 : index
    %6 = vector.load %arg2[%c0_8, %c0_9] : memref<64x32xf32, #tpu.memory_space<vmem>>, vector<64x32xf32>
    %c0_10 = arith.constant 0 : index
    %c0_11 = arith.constant 0 : index
    %c0_12 = arith.constant 0 : index
    %7 = vector.load %arg3[%c0_10, %c0_11, %c0_12] : memref<4x32x32xf32, #tpu.memory_space<vmem>>, vector<1x32x32xf32>
    %8 = vector.shape_cast %7 : vector<1x32x32xf32> to vector<32x32xf32>
    %cst_13 = arith.constant dense<0.000000e+00> : vector<64x32xf32>
    %9 = tpu.matmul %6, %8, %cst_13 {dimension_numbers = #tpu.dot_dimension_numbers<[1], [0], [0], [1], [0, 0, 1, 1], [], []>} : vector<64x32xf32>, vector<32x32xf32>, vector<64x32xf32> -> vector<64x32xf32>
    %c0_14 = arith.constant 0 : index
    %c0_15 = arith.constant 0 : index
    %c0_16 = arith.constant 0 : index
    %10 = vector.load %arg5[%c0_14, %c0_15, %c0_16] : memref<4x1x32xf32, #tpu.memory_space<vmem>>, vector<1x1x32xf32>
    %11 = vector.shape_cast %10 : vector<1x1x32xf32> to vector<1x32xf32>
    %12 = vector.broadcast %11 : vector<1x32xf32> to vector<64x32xf32>
    %13 = arith.addf %9, %12 : vector<64x32xf32>
    %c0_17 = arith.constant 0 : index
    %c0_18 = arith.constant 0 : index
    %14 = vector.load %arg9[%c0_17, %c0_18] : memref<64x32xf32, #tpu.memory_space<vmem>>, vector<64x32xf32>
    tpu.vector_store %arg9[%c0_17, %c0_18], %13 {strides = array<i32>} : memref<64x32xf32, #tpu.memory_space<vmem>>, vector<64x32xf32>,
    %c1 = arith.constant 1 : index
    %c0_19 = arith.constant 0 : index
    %c0_20 = arith.constant 0 : index
    %15 = vector.load %arg3[%c1, %c0_19, %c0_20] : memref<4x32x32xf32, #tpu.memory_space<vmem>>, vector<1x32x32xf32>
    %16 = vector.shape_cast %15 : vector<1x32x32xf32> to vector<32x32xf32>
    %cst_21 = arith.constant dense<0.000000e+00> : vector<64x32xf32>
    %17 = tpu.matmul %6, %16, %cst_21 {dimension_numbers = #tpu.dot_dimension_numbers<[1], [0], [0], [1], [0, 0, 1, 1], [], []>} : vector<64x32xf32>, vector<32x32xf32>, vector<64x32xf32> -> vector<64x32xf32>
    %c1_22 = arith.constant 1 : index
    %c0_23 = arith.constant 0 : index
    %c0_24 = arith.constant 0 : index
    %18 = vector.load %arg5[%c1_22, %c0_23, %c0_24] : memref<4x1x32xf32, #tpu.memory_space<vmem>>, vector<1x1x32xf32>
    %19 = vector.shape_cast %18 : vector<1x1x32xf32> to vector<1x32xf32>
    %20 = vector.broadcast %19 : vector<1x32xf32> to vector<64x32xf32>
    %21 = arith.addf %17, %20 : vector<64x32xf32>
    %c0_25 = arith.constant 0 : index
    %c0_26 = arith.constant 0 : index
    %22 = vector.load %arg10[%c0_25, %c0_26] : memref<64x32xf32, #tpu.memory_space<vmem>>, vector<64x32xf32>
    tpu.vector_store %arg10[%c0_25, %c0_26], %21 {strides = array<i32>} : memref<64x32xf32, #tpu.memory_space<vmem>>, vector<64x32xf32>,
    %c2 = arith.constant 2 : index
    %c0_27 = arith.constant 0 : index
    %c0_28 = arith.constant 0 : index
    %23 = vector.load %arg3[%c2, %c0_27, %c0_28] : memref<4x32x32xf32, #tpu.memory_space<vmem>>, vector<1x32x32xf32>
    %24 = vector.shape_cast %23 : vector<1x32x32xf32> to vector<32x32xf32>
    %cst_29 = arith.constant dense<0.000000e+00> : vector<64x32xf32>
    %25 = tpu.matmul %6, %24, %cst_29 {dimension_numbers = #tpu.dot_dimension_numbers<[1], [0], [0], [1], [0, 0, 1, 1], [], []>} : vector<64x32xf32>, vector<32x32xf32>, vector<64x32xf32> -> vector<64x32xf32>
    %c2_30 = arith.constant 2 : index
    %c0_31 = arith.constant 0 : index
    %c0_32 = arith.constant 0 : index
    %26 = vector.load %arg5[%c2_30, %c0_31, %c0_32] : memref<4x1x32xf32, #tpu.memory_space<vmem>>, vector<1x1x32xf32>
    %27 = vector.shape_cast %26 : vector<1x1x32xf32> to vector<1x32xf32>
    %28 = vector.broadcast %27 : vector<1x32xf32> to vector<64x32xf32>
    %29 = arith.addf %25, %28 : vector<64x32xf32>
    %c0_33 = arith.constant 0 : index
    %c0_34 = arith.constant 0 : index
    %30 = vector.load %arg11[%c0_33, %c0_34] : memref<64x32xf32, #tpu.memory_space<vmem>>, vector<64x32xf32>
    tpu.vector_store %arg11[%c0_33, %c0_34], %29 {strides = array<i32>} : memref<64x32xf32, #tpu.memory_space<vmem>>, vector<64x32xf32>,
    %c3 = arith.constant 3 : index
    %c0_35 = arith.constant 0 : index
    %c0_36 = arith.constant 0 : index
    %31 = vector.load %arg3[%c3, %c0_35, %c0_36] : memref<4x32x32xf32, #tpu.memory_space<vmem>>, vector<1x32x32xf32>
    %32 = vector.shape_cast %31 : vector<1x32x32xf32> to vector<32x32xf32>
    %cst_37 = arith.constant dense<0.000000e+00> : vector<64x32xf32>
    %33 = tpu.matmul %6, %32, %cst_37 {dimension_numbers = #tpu.dot_dimension_numbers<[1], [0], [0], [1], [0, 0, 1, 1], [], []>} : vector<64x32xf32>, vector<32x32xf32>, vector<64x32xf32> -> vector<64x32xf32>
    %c3_38 = arith.constant 3 : index
    %c0_39 = arith.constant 0 : index
    %c0_40 = arith.constant 0 : index
    %34 = vector.load %arg5[%c3_38, %c0_39, %c0_40] : memref<4x1x32xf32, #tpu.memory_space<vmem>>, vector<1x1x32xf32>
    %35 = vector.shape_cast %34 : vector<1x1x32xf32> to vector<1x32xf32>
    %36 = vector.broadcast %35 : vector<1x32xf32> to vector<64x32xf32>
    %37 = arith.addf %33, %36 : vector<64x32xf32>
    %c0_41 = arith.constant 0 : index
    %c0_42 = arith.constant 0 : index
    %38 = vector.load %arg12[%c0_41, %c0_42] : memref<64x32xf32, #tpu.memory_space<vmem>>, vector<64x32xf32>
    tpu.vector_store %arg12[%c0_41, %c0_42], %37 {strides = array<i32>} : memref<64x32xf32, #tpu.memory_space<vmem>>, vector<64x32xf32>,
    %c0_43 = arith.constant 0 : index
    %c0_44 = arith.constant 0 : index
    %39 = vector.load %arg1[%c0_43, %c0_44] : memref<8x1xi32, #tpu.memory_space<vmem>>, vector<8x1xi32>
    %c0_45 = arith.constant 0 : index
    %40 = memref.load %arg0[%c0_45] : memref<1xi32, #tpu.memory_space<smem>>
    %c0_i32 = arith.constant 0 : i32
    %c0_i32_46 = arith.constant 0 : i32
    %41 = arith.subi %40, %c0_i32_46 : i32
    %42 = arith.addi %c0_i32_46, %41 : i32
    %c1_i32 = arith.constant 1 : i32
    scf.for %arg15 = %c0_i32_46 to %42 step %c1_i32  : i32 {
      %c8_i32 = arith.constant 8 : i32
      %51 = arith.muli %arg15, %c8_i32 : i32
      %52 = tpu.assume_multiple %51, 8 : i32
      %c0_57 = arith.constant 0 : index
      %c0_58 = arith.constant 0 : index
      %53 = vector.load %arg13[%c0_57, %c0_58] : memref<8x32xf32, #tpu.memory_space<vmem>>, vector<8x32xf32>
      %c0_59 = arith.constant 0 : index
      %c0_60 = arith.constant 0 : index
      %54 = vector.load %arg14[%c0_59, %c0_60] : memref<8x32xf32, #tpu.memory_space<vmem>>, vector<8x32xf32>
      %55 = arith.index_cast %52 : i32 to index
      %c0_61 = arith.constant 0 : index
      %56 = vector.load %arg9[%55, %c0_61] : memref<64x32xf32, #tpu.memory_space<vmem>>, vector<8x32xf32>
      %c0_62 = arith.constant 0 : index
      %c0_63 = arith.constant 0 : index
      %c0_64 = arith.constant 0 : index
      %57 = vector.load %arg4[%c0_62, %c0_63, %c0_64] : memref<4x32x32xf32, #tpu.memory_space<vmem>>, vector<1x32x32xf32>
      %58 = vector.shape_cast %57 : vector<1x32x32xf32> to vector<32x32xf32>
      %cst_65 = arith.constant dense<0.000000e+00> : vector<8x32xf32>
      %59 = tpu.matmul %53, %58, %cst_65 {dimension_numbers = #tpu.dot_dimension_numbers<[1], [0], [0], [1], [0, 0, 1, 1], [], []>} : vector<8x32xf32>, vector<32x32xf32>, vector<8x32xf32> -> vector<8x32xf32>
      %60 = arith.addf %56, %59 : vector<8x32xf32>
      %61 = arith.negf %60 : vector<8x32xf32>
      %62 = math.exp %61 : vector<8x32xf32>
      %cst_66 = arith.constant 1.000000e+00 : f32
      %63 = vector.broadcast %cst_66 : f32 to vector<8x32xf32>
      %64 = arith.addf %63, %62 : vector<8x32xf32>
      %65 = arith.divf %63, %64 : vector<8x32xf32>
      %66 = arith.index_cast %52 : i32 to index
      %c0_67 = arith.constant 0 : index
      %67 = vector.load %arg10[%66, %c0_67] : memref<64x32xf32, #tpu.memory_space<vmem>>, vector<8x32xf32>
      %c1_68 = arith.constant 1 : index
      %c0_69 = arith.constant 0 : index
      %c0_70 = arith.constant 0 : index
      %68 = vector.load %arg4[%c1_68, %c0_69, %c0_70] : memref<4x32x32xf32, #tpu.memory_space<vmem>>, vector<1x32x32xf32>
      %69 = vector.shape_cast %68 : vector<1x32x32xf32> to vector<32x32xf32>
      %cst_71 = arith.constant dense<0.000000e+00> : vector<8x32xf32>
      %70 = tpu.matmul %53, %69, %cst_71 {dimension_numbers = #tpu.dot_dimension_numbers<[1], [0], [0], [1], [0, 0, 1, 1], [], []>} : vector<8x32xf32>, vector<32x32xf32>, vector<8x32xf32> -> vector<8x32xf32>
      %71 = arith.addf %67, %70 : vector<8x32xf32>
      %72 = arith.negf %71 : vector<8x32xf32>
      %73 = math.exp %72 : vector<8x32xf32>
      %cst_72 = arith.constant 1.000000e+00 : f32
      %74 = vector.broadcast %cst_72 : f32 to vector<8x32xf32>
      %75 = arith.addf %74, %73 : vector<8x32xf32>
      %76 = arith.divf %74, %75 : vector<8x32xf32>
      %77 = arith.index_cast %52 : i32 to index
      %c0_73 = arith.constant 0 : index
      %78 = vector.load %arg11[%77, %c0_73] : memref<64x32xf32, #tpu.memory_space<vmem>>, vector<8x32xf32>
      %c2_74 = arith.constant 2 : index
      %c0_75 = arith.constant 0 : index
      %c0_76 = arith.constant 0 : index
      %79 = vector.load %arg4[%c2_74, %c0_75, %c0_76] : memref<4x32x32xf32, #tpu.memory_space<vmem>>, vector<1x32x32xf32>
      %80 = vector.shape_cast %79 : vector<1x32x32xf32> to vector<32x32xf32>
      %cst_77 = arith.constant dense<0.000000e+00> : vector<8x32xf32>
      %81 = tpu.matmul %53, %80, %cst_77 {dimension_numbers = #tpu.dot_dimension_numbers<[1], [0], [0], [1], [0, 0, 1, 1], [], []>} : vector<8x32xf32>, vector<32x32xf32>, vector<8x32xf32> -> vector<8x32xf32>
      %82 = arith.addf %78, %81 : vector<8x32xf32>
      %83 = math.tanh %82 : vector<8x32xf32>
      %84 = arith.index_cast %52 : i32 to index
      %c0_78 = arith.constant 0 : index
      %85 = vector.load %arg12[%84, %c0_78] : memref<64x32xf32, #tpu.memory_space<vmem>>, vector<8x32xf32>
      %c3_79 = arith.constant 3 : index
      %c0_80 = arith.constant 0 : index
      %c0_81 = arith.constant 0 : index
      %86 = vector.load %arg4[%c3_79, %c0_80, %c0_81] : memref<4x32x32xf32, #tpu.memory_space<vmem>>, vector<1x32x32xf32>
      %87 = vector.shape_cast %86 : vector<1x32x32xf32> to vector<32x32xf32>
      %cst_82 = arith.constant dense<0.000000e+00> : vector<8x32xf32>
      %88 = tpu.matmul %53, %87, %cst_82 {dimension_numbers = #tpu.dot_dimension_numbers<[1], [0], [0], [1], [0, 0, 1, 1], [], []>} : vector<8x32xf32>, vector<32x32xf32>, vector<8x32xf32> -> vector<8x32xf32>
      %89 = arith.addf %85, %88 : vector<8x32xf32>
      %90 = arith.negf %89 : vector<8x32xf32>
      %91 = math.exp %90 : vector<8x32xf32>
      %cst_83 = arith.constant 1.000000e+00 : f32
      %92 = vector.broadcast %cst_83 : f32 to vector<8x32xf32>
      %93 = arith.addf %92, %91 : vector<8x32xf32>
      %94 = arith.divf %92, %93 : vector<8x32xf32>
      %95 = arith.mulf %76, %54 : vector<8x32xf32>
      %96 = arith.mulf %65, %83 : vector<8x32xf32>
      %97 = arith.addf %95, %96 : vector<8x32xf32>
      %98 = math.tanh %97 : vector<8x32xf32>
      %99 = arith.mulf %94, %98 : vector<8x32xf32>
      %100 = vector.broadcast %arg15 : i32 to vector<8x1xi32>
      %101 = arith.cmpi slt, %100, %39 : vector<8x1xi32>
      %102 = vector.shape_cast %101 : vector<8x1xi1> to vector<8x1xi1>
      %103 = vector.broadcast %102 : vector<8x1xi1> to vector<8x32xi1>
      %104 = arith.select %103, %99, %53 : vector<8x32xi1>, vector<8x32xf32>
      %c0_84 = arith.constant 0 : index
      %c0_85 = arith.constant 0 : index
      %105 = vector.load %arg13[%c0_84, %c0_85] : memref<8x32xf32, #tpu.memory_space<vmem>>, vector<8x32xf32>
      tpu.vector_store %arg13[%c0_84, %c0_85], %104 {strides = array<i32>} : memref<8x32xf32, #tpu.memory_space<vmem>>, vector<8x32xf32>,
      %106 = vector.shape_cast %101 : vector<8x1xi1> to vector<8x1xi1>
      %107 = vector.broadcast %106 : vector<8x1xi1> to vector<8x32xi1>
      %108 = arith.select %107, %97, %54 : vector<8x32xi1>, vector<8x32xf32>
      %c0_86 = arith.constant 0 : index
      %c0_87 = arith.constant 0 : index
      %109 = vector.load %arg14[%c0_86, %c0_87] : memref<8x32xf32, #tpu.memory_space<vmem>>, vector<8x32xf32>
      tpu.vector_store %arg14[%c0_86, %c0_87], %108 {strides = array<i32>} : memref<8x32xf32, #tpu.memory_space<vmem>>, vector<8x32xf32>,
      %cst_88 = arith.constant 0.000000e+00 : f32
      %110 = vector.shape_cast %101 : vector<8x1xi1> to vector<8x1xi1>
      %111 = vector.broadcast %110 : vector<8x1xi1> to vector<8x32xi1>
      %112 = vector.broadcast %cst_88 : f32 to vector<8x32xf32>
      %113 = arith.select %111, %99, %112 : vector<8x32xi1>, vector<8x32xf32>
      %114 = arith.index_cast %arg15 : i32 to index
      %c0_89 = arith.constant 0 : index
      %c0_90 = arith.constant 0 : index
      %115 = vector.load %arg6[%114, %c0_89, %c0_90] : memref<8x8x32xf32, #tpu.memory_space<vmem>>, vector<1x8x32xf32>
      %116 = vector.shape_cast %115 : vector<1x8x32xf32> to vector<8x32xf32>
      %117 = vector.shape_cast %113 : vector<8x32xf32> to vector<1x8x32xf32>
      tpu.vector_store %arg6[%114, %c0_89, %c0_90], %117 {strides = array<i32>} : memref<8x8x32xf32, #tpu.memory_space<vmem>>, vector<1x8x32xf32>,
    }
    %c0_47 = arith.constant 0 : index
    %c0_48 = arith.constant 0 : index
    %43 = vector.load %arg13[%c0_47, %c0_48] : memref<8x32xf32, #tpu.memory_space<vmem>>, vector<8x32xf32>
    %c0_49 = arith.constant 0 : index
    %c0_50 = arith.constant 0 : index
    %c0_51 = arith.constant 0 : index
    %44 = vector.load %arg7[%c0_49, %c0_50, %c0_51] : memref<1x8x32xf32, #tpu.memory_space<vmem>>, vector<1x8x32xf32>
    %45 = vector.shape_cast %44 : vector<1x8x32xf32> to vector<8x32xf32>
    %46 = vector.shape_cast %43 : vector<8x32xf32> to vector<1x8x32xf32>
    tpu.vector_store %arg7[%c0_49, %c0_50, %c0_51], %46 {strides = array<i32>} : memref<1x8x32xf32, #tpu.memory_space<vmem>>, vector<1x8x32xf32>,
    %c0_52 = arith.constant 0 : index
    %c0_53 = arith.constant 0 : index
    %47 = vector.load %arg14[%c0_52, %c0_53] : memref<8x32xf32, #tpu.memory_space<vmem>>, vector<8x32xf32>
    %c0_54 = arith.constant 0 : index
    %c0_55 = arith.constant 0 : index
    %c0_56 = arith.constant 0 : index
    %48 = vector.load %arg8[%c0_54, %c0_55, %c0_56] : memref<1x8x32xf32, #tpu.memory_space<vmem>>, vector<1x8x32xf32>
    %49 = vector.shape_cast %48 : vector<1x8x32xf32> to vector<8x32xf32>
    %50 = vector.shape_cast %47 : vector<8x32xf32> to vector<1x8x32xf32>
    tpu.vector_store %arg8[%c0_54, %c0_55, %c0_56], %50 {strides = array<i32>} : memref<1x8x32xf32, #tpu.memory_space<vmem>>, vector<1x8x32xf32>,
    return
  }
}

</mosaic_0001>

<bundles_post_ra>
// kernel: tpu_custom_call.1
= control target key start
LH: loop header
LB: loop body
LE: loop exit
PB: predicated region body
PF: predicated region fallthrough
CT: control target
= control target key end

     0   :  { %15 = vsyncpa [#allocation10], 0  ;;  %s1780_s0 = inlined_call_operand.<no memory space> [shape: s32[1], index: 0, kind: input, shape index: {}]   ;;  %s1781_s1 = inlined_call_operand.vmem [shape: s32[8,1], index: 1, kind: input, shape index: {}]   ;;  %s1782_s2 = inlined_call_operand.vmem [shape: f32[64,32], index: 2, kind: input, shape index: {}]   ;;  %s1783_s3 = inlined_call_operand.hbm [shape: f32[4,32,32], index: 3, kind: input, shape index: {}]   ;;  %s1784_s4 = inlined_call_operand.hbm [shape: f32[4,32,32], index: 4, kind: input, shape index: {}]   ;;  %s1785_s5 = inlined_call_operand.vmem [shape: f32[4,1,32], index: 5, kind: input, shape index: {}]   ;;  %s1786_s6 = inlined_call_operand.hbm [shape: f32[8,8,32], index: 6, kind: output, shape index: {0}]   ;;  %s1787_s7 = inlined_call_operand.hbm [shape: f32[1,8,32], index: 7, kind: output, shape index: {1}]   ;;  %s1788_s8 = inlined_call_operand.hbm [shape: f32[1,8,32], index: 8, kind: output, shape index: {2}]  }
   0x1   :  { %16 = vsyncpa [#allocation13], 0 }
   0x2   :  { %17 = vsyncpa [#allocation11], 0 }
   0x3   :  { %18 = vsyncpa [#allocation16], 0  ;;  %s1488_s27 = smov [#allocation9]   ;;  %s1362_s9 = scalar_lea.hbm %s1783_s3, 2048 }
   0x4   :  { %s30_s28 = sshll.u32 %s1488_s27, 4  ;;  %p1363_p0 = scmp.ne.s32.totalorder %s1783_s3, %s1362_s9  ;;  %s31_s28 = int_to_ptr.vmem [resolvable:$true] %s30_s28 }
   0x5   :  { %p1366_p1 = scmp.lt.u32.totalorder %s1362_s9, %s1783_s3 }
   0x7   :  { %p1368_p2 = pnand %p1366_p1, %p1363_p0 }
   0x9   :  { %1371 = shalt.err (!%p1368_p2)
}
   0xa   :  { %s1372_s14 = scalar_lea.vmem %s31_s28, 2048  ;;  %p1377_p4 = scmp.lt.s32.totalorder %s31_s28, %s31_s28 }
   0xb   :  { %p1373_p3 = scmp.ne.s32.totalorder %s31_s28, %s1372_s14  ;;  %p1378_p5 = scmp.lt.s32.totalorder %s1372_s14, %s1372_s14 }
   0xd   :  { %p1379_p6 = por %p1378_p5, %p1377_p4 }
   0xf   :  { %p1380_p7 = pnand %p1379_p6, %p1373_p3 }
  0x11   :  { %1383 = shalt.err (!%p1380_p7)
}
  0x12   :  { %s1489_s15 = smov 128   ;;  %s1490_s16 = smov 8  }
  0x13   :  { %36 = dma.hbm_to_vmem [thread:$0]  %s1783_s3, 2048, %s31_s28, [#allocation10], %s1489_s15, %s1489_s15, %s1490_s16  }
  0x14   :  { %s1491_s19 = smov [#allocation12]   ;;  %s1384_s23 = scalar_lea.hbm %s1784_s4, 2048 }
  0x15   :  { %s42_s20 = sshll.u32 %s1491_s19, 4  ;;  %p1385_p8 = scmp.ne.s32.totalorder %s1784_s4, %s1384_s23  ;;  %s43_s20 = int_to_ptr.vmem [resolvable:$true] %s42_s20 }
  0x16   :  { %p1388_p9 = scmp.lt.u32.totalorder %s1384_s23, %s1784_s4 }
  0x18   :  { %p1390_p10 = pnand %p1388_p9, %p1385_p8 }
  0x1a   :  { %1393 = shalt.err (!%p1390_p10)
}
  0x1b   :  { %s1394_s29 = scalar_lea.vmem %s43_s20, 2048  ;;  %p1399_p12 = scmp.lt.s32.totalorder %s43_s20, %s43_s20 }
  0x1c   :  { %p1395_p11 = scmp.ne.s32.totalorder %s43_s20, %s1394_s29  ;;  %p1400_p13 = scmp.lt.s32.totalorder %s1394_s29, %s1394_s29 }
  0x1e   :  { %p1401_p0 = por %p1400_p13, %p1399_p12 }
  0x20   :  { %p1402_p1 = pnand %p1401_p0, %p1395_p11 }
  0x22   :  { %1405 = shalt.err (!%p1402_p1)
}
  0x23   :  { %48 = dma.hbm_to_vmem [thread:$0]  %s1784_s4, 2048, %s43_s20, [#allocation13], %s1489_s15, %s1489_s15, %s1490_s16  }
  0x24   :  { %1476 = dma.done.wait [#allocation10], 2048  }
  0x25   :  { %1477 = vsyncadd [#allocation10], 4294965248 }
  0x26   :  { %1478 = dma.done.wait [#allocation13], 2048  }
  0x27   :  { %1479 = vsyncadd [#allocation13], 4294965248  ;;  %vm57_vm0 = vcmask 261120   ;;  %v1492_v0 = vmov 0.0   ;;  %v1588_v1 = vld [vmem:[%s1781_s1] sm:$0xff]  ;;  %v76_v2 = vld [vmem:[#allocation9] sm:$0xff] }
  0x28   :  { %58 = vst.msk [vmem:[#allocation14] sm:$0xff] %vm57_vm0, %v1492_v0  ;;  %59 = vst.msk [vmem:[#allocation14 + $0x8] sm:$0xff] %vm57_vm0, %v1492_v0  ;;  %v77_v3 = vld [vmem:[#allocation9 + $0x8] sm:$0xff]  ;;  %v225_v5 = vld [vmem:[#allocation9 + $0x20] sm:$0xff]  ;;  %p1068_p2 = scmp.le.s32.totalorder %s1780_s0, 0 }
  0x29   :  { %60 = vst.msk [vmem:[#allocation14 + $0x10] sm:$0xff] %vm57_vm0, %v1492_v0  ;;  %61 = vst.msk [vmem:[#allocation14 + $0x18] sm:$0xff] %vm57_vm0, %v1492_v0  ;;  %v1269_v4 = vpack.c.bf16 %v77_v3, %v76_v2  ;;  %v226_v6 = vld [vmem:[#allocation9 + $0x28] sm:$0xff]  ;;  %v78_v7 = vld [vmem:[#allocation9 + $0x10] sm:$0xff]  ;;  %s1693_s10 = smov (!%p1068_p2), 0  }
  0x2a   :  { %62 = vst.msk [vmem:[#allocation14 + $0x20] sm:$0xff] %vm57_vm0, %v1492_v0  ;;  %63 = vst.msk [vmem:[#allocation14 + $0x28] sm:$0xff] %vm57_vm0, %v1492_v0  ;;  %v1277_v8 = vpack.c.bf16 %v226_v6, %v225_v5  ;;  %v79_v9 = vld [vmem:[#allocation9 + $0x18] sm:$0xff]  ;;  %v227_v10 = vld [vmem:[#allocation9 + $0x30] sm:$0xff] }
  0x2b   :  { %64 = vst.msk [vmem:[#allocation14 + $0x30] sm:$0xff] %vm57_vm0, %v1492_v0  ;;  %65 = vst.msk [vmem:[#allocation14 + $0x38] sm:$0xff] %vm57_vm0, %v1492_v0  ;;  %v228_v11 = vld [vmem:[#allocation9 + $0x38] sm:$0xff]  ;;  %1270 = vmatprep.subr.bf16.mxu0 %v1269_v4  ;;  %v1273_v12 = vpack.c.bf16 %v79_v9, %v78_v7  ;;  %v68_v14 = vld [vmem:[%s1782_s2] sm:$0xff] }
  0x2c   :  { %66 = vst.msk [vmem:[#allocation6] sm:$0xff] %vm57_vm0, %v1492_v0  ;;  %67 = vst.msk [vmem:[#allocation7] sm:$0xff] %vm57_vm0, %v1492_v0  ;;  %v1281_v13 = vpack.c.bf16 %v228_v11, %v227_v10  ;;  %v351_v15 = vld [vmem:[#allocation9 + $0x40] sm:$0xff]  ;;  %1278 = vmatprep.subr.bf16.mxu1 %v1277_v8  ;;  %1272 = vmatpush3.bf16.msra.mxu0 %v1269_v4  ;;  %v352_v16 = vld [vmem:[#allocation9 + $0x48] sm:$0xff] }
  0x2d   :  { %v477_v17 = vld [vmem:[#allocation9 + $0x60] sm:$0xff]  ;;  %v478_v18 = vld [vmem:[#allocation9 + $0x68] sm:$0xff]  ;;  %1280 = vmatpush3.bf16.msra.mxu1 %v1277_v8  ;;  %1274 = vmatprep.subr.bf16.mxu0 %v1273_v12  ;;  %v1285_v19 = vpack.c.bf16 %v352_v16, %v351_v15  ;;  %v353_v21 = vld [vmem:[#allocation9 + $0x50] sm:$0xff] }
  0x2e   :  { %1282 = vmatprep.subr.bf16.mxu1 %v1281_v13  ;;  %1153 = vmatprep.mubr.msk.f32.mxu0 %vm57_vm0, %v68_v14  ;;  %v1293_v20 = vpack.c.bf16 %v478_v18, %v477_v17  ;;  %v354_v22 = vld [vmem:[#allocation9 + $0x58] sm:$0xff]  ;;  %v479_v24 = vld [vmem:[#allocation9 + $0x70] sm:$0xff]  ;;  %v70_v26 = vld [vmem:[%s1782_s2 + $0x10] sm:$0xff] }
  0x2f   :  { %1173 = vmatprep.mubr.msk.f32.mxu1 %vm57_vm0, %v68_v14  ;;  %v69_v23 = vld [vmem:[%s1782_s2 + $0x8] sm:$0xff]  ;;  %v1289_v27 = vpack.c.bf16 %v354_v22, %v353_v21  ;;  %v71_v29 = vld [vmem:[%s1782_s2 + $0x18] sm:$0xff]  ;;  %v72_v30 = vld [vmem:[%s1782_s2 + $0x20] sm:$0xff] }
  0x30   :  { %1276 = vmatpush3.bf16.msra.mxu0 %v1273_v12  ;;  %v480_v25 = vld [vmem:[#allocation9 + $0x78] sm:$0xff]  ;;  %v74_v32 = vld [vmem:[%s1782_s2 + $0x30] sm:$0xff]  ;;  %v75_v33 = vld [vmem:[%s1782_s2 + $0x38] sm:$0xff] }
  0x31   :  { %1284 = vmatpush3.bf16.msra.mxu1 %v1281_v13  ;;  %1286 = vmatprep.subr.bf16.mxu0 %v1285_v19  ;;  %v1297_v28 = vpack.c.bf16 %v480_v25, %v479_v24  ;;  %v73_v31 = vld [vmem:[%s1782_s2 + $0x28] sm:$0xff]  ;;  %v1029_v34 = vld [vmem:[%s1785_s5] ss:$0 sm:$0xff]  ;;  %v1039_v35 = vld [vmem:[%s1785_s5 + $0x1] ss:$0 sm:$0xff] }
  0x32   :  { %1294 = vmatprep.subr.bf16.mxu1 %v1293_v20  ;;  %v1049_v4 = vld [vmem:[%s1785_s5 + $0x2] ss:$0 sm:$0xff]  ;;  %v1059_v6 = vld [vmem:[%s1785_s5 + $0x3] ss:$0 sm:$0xff] }
  0x33   :  { %1154 = vmatmul.mubr.msk.f32.vlgmr.msra.gmra.mrb[0].mxu0 %vm57_vm0, %v69_v23 }
  0x34   :  { %1174 = vmatmul.mubr.msk.f32.vlgmr.msra.gmra.mrb[0].mxu1 %vm57_vm0, %v69_v23  ;;  %1288 = vmatpush3.bf16.msra.mxu0 %v1285_v19 }
  0x35   :  { %1296 = vmatpush3.bf16.msra.mxu1 %v1293_v20  ;;  %1156 = vmatprep.mubr.msk.f32.mxu0 %vm57_vm0, %v70_v26 }
  0x36   :  { %1176 = vmatprep.mubr.msk.f32.mxu1 %vm57_vm0, %v70_v26  ;;  %1290 = vmatprep.subr.bf16.mxu0 %v1289_v27 }
  0x37   :  { %1157 = vmatmul.mubr.msk.f32.gmra.mrb[2].mxu0 %vm57_vm0, %v71_v29  ;;  %1298 = vmatprep.subr.bf16.mxu1 %v1297_v28 }
  0x38   :  { %1177 = vmatmul.mubr.msk.f32.gmra.mrb[2].mxu1 %vm57_vm0, %v71_v29  ;;  %1159 = vmatprep.mubr.msk.f32.mxu0 %vm57_vm0, %v72_v30 }
  0x39   :  { %1179 = vmatprep.mubr.msk.f32.mxu1 %vm57_vm0, %v72_v30  ;;  %1292 = vmatpush3.bf16.msra.mxu0 %v1289_v27 }
  0x3a   :  { %1300 = vmatpush3.bf16.msra.mxu1 %v1297_v28 }
  0x3b   :  { %1160 = vmatmul.mubr.msk.f32.gmra.mrb[4].mxu0 %vm57_vm0, %v73_v31 }
  0x3c   :  { %1180 = vmatmul.mubr.msk.f32.gmra.mrb[4].mxu1 %vm57_vm0, %v73_v31  ;;  %1162 = vmatprep.mubr.msk.f32.mxu0 %vm57_vm0, %v74_v32 }
  0x3d   :  { %1182 = vmatprep.mubr.msk.f32.mxu1 %vm57_vm0, %v74_v32 }
  0x3f   :  { %1163 = vmatmul.mubr.msk.f32.gmra.mrb[6].mxu0 %vm57_vm0, %v75_v33 }
  0x40   :  { %1183 = vmatmul.mubr.msk.f32.gmra.mrb[6].mxu1 %vm57_vm0, %v75_v33  ;;  %1193 = vmatprep.mubr.msk.f32.mxu0 %vm57_vm0, %v68_v14 }
  0x41   :  { %1213 = vmatprep.mubr.msk.f32.mxu1 %vm57_vm0, %v68_v14 }
  0x43   :  { %1194 = vmatmul.mubr.msk.f32.vlgmr.msra.gmra.mrb[8].mxu0 %vm57_vm0, %v69_v23 }
  0x44   :  { %1214 = vmatmul.mubr.msk.f32.vlgmr.msra.gmra.mrb[8].mxu1 %vm57_vm0, %v69_v23  ;;  %1196 = vmatprep.mubr.msk.f32.mxu0 %vm57_vm0, %v70_v26 }
  0x45   :  { %1216 = vmatprep.mubr.msk.f32.mxu1 %vm57_vm0, %v70_v26 }
  0x47   :  { %1197 = vmatmul.mubr.msk.f32.gmra.mrb[10].mxu0 %vm57_vm0, %v71_v29 }
  0x48   :  { %1217 = vmatmul.mubr.msk.f32.gmra.mrb[10].mxu1 %vm57_vm0, %v71_v29  ;;  %1199 = vmatprep.mubr.msk.f32.mxu0 %vm57_vm0, %v72_v30 }
  0x49   :  { %1219 = vmatprep.mubr.msk.f32.mxu1 %vm57_vm0, %v72_v30 }
  0x4b   :  { %1200 = vmatmul.mubr.msk.f32.gmra.mrb[12].mxu0 %vm57_vm0, %v73_v31 }
  0x4c   :  { %1220 = vmatmul.mubr.msk.f32.gmra.mrb[12].mxu1 %vm57_vm0, %v73_v31  ;;  %1202 = vmatprep.mubr.msk.f32.mxu0 %vm57_vm0, %v74_v32 }
  0x4d   :  { %1222 = vmatprep.mubr.msk.f32.mxu1 %vm57_vm0, %v74_v32 }
  0x4f   :  { %1203 = vmatmul.mubr.msk.f32.gmra.mrb[14].mxu0 %vm57_vm0, %v75_v33 }
  0x50   :  { %1223 = vmatmul.mubr.msk.f32.gmra.mrb[14].mxu1 %vm57_vm0, %v75_v33 }
 0x106   :  { %v1155_v36 = vpop.f32.mrb[0].mxu0 }
 0x107   :  { %v183_v37 = vadd.f32 %v1155_v36, %v1029_v34  ;;  %v1175_v38 = vpop.f32.mrb[0].mxu1  ;;  %v177_v39 = vpop.f32.mrb[1].mxu0 }
 0x108   :  { %v309_v40 = vadd.f32 %v1175_v38, %v1039_v35  ;;  %v178_v41 = vadd.f32 %v1029_v34, %v177_v39  ;;  %v303_v42 = vpop.f32.mrb[1].mxu1 }
 0x109   :  { %217 = vst.msk [vmem:[#allocation2 + $0x8] sm:$0xff] %vm57_vm0, %v183_v37  ;;  %v304_v43 = vadd.f32 %v1039_v35, %v303_v42 }
 0x10a   :  { %343 = vst.msk [vmem:[#allocation3 + $0x8] sm:$0xff] %vm57_vm0, %v309_v40  ;;  %216 = vst.msk [vmem:[#allocation2] sm:$0xff] %vm57_vm0, %v178_v41  ;;  %v1158_v44 = vpop.f32.mrb[2].mxu0 }
 0x10b   :  { %342 = vst.msk [vmem:[#allocation3] sm:$0xff] %vm57_vm0, %v304_v43  ;;  %v193_v45 = vadd.f32 %v1158_v44, %v1029_v34  ;;  %v1178_v46 = vpop.f32.mrb[2].mxu1  ;;  %v187_v47 = vpop.f32.mrb[3].mxu0 }
 0x10c   :  { %v319_v48 = vadd.f32 %v1178_v46, %v1039_v35  ;;  %v188_v49 = vadd.f32 %v1029_v34, %v187_v47  ;;  %v313_v50 = vpop.f32.mrb[3].mxu1 }
 0x10d   :  { %219 = vst.msk [vmem:[#allocation2 + $0x18] sm:$0xff] %vm57_vm0, %v193_v45  ;;  %v314_v51 = vadd.f32 %v1039_v35, %v313_v50 }
 0x10e   :  { %345 = vst.msk [vmem:[#allocation3 + $0x18] sm:$0xff] %vm57_vm0, %v319_v48  ;;  %218 = vst.msk [vmem:[#allocation2 + $0x10] sm:$0xff] %vm57_vm0, %v188_v49  ;;  %v1161_v52 = vpop.f32.mrb[4].mxu0 }
 0x10f   :  { %344 = vst.msk [vmem:[#allocation3 + $0x10] sm:$0xff] %vm57_vm0, %v314_v51  ;;  %v203_v53 = vadd.f32 %v1161_v52, %v1029_v34  ;;  %v1181_v54 = vpop.f32.mrb[4].mxu1  ;;  %v197_v55 = vpop.f32.mrb[5].mxu0 }
 0x110   :  { %v329_v56 = vadd.f32 %v1181_v54, %v1039_v35  ;;  %v198_v57 = vadd.f32 %v1029_v34, %v197_v55  ;;  %v323_v58 = vpop.f32.mrb[5].mxu1 }
 0x111   :  { %221 = vst.msk [vmem:[#allocation2 + $0x28] sm:$0xff] %vm57_vm0, %v203_v53  ;;  %v324_v59 = vadd.f32 %v1039_v35, %v323_v58 }
 0x112   :  { %347 = vst.msk [vmem:[#allocation3 + $0x28] sm:$0xff] %vm57_vm0, %v329_v56  ;;  %220 = vst.msk [vmem:[#allocation2 + $0x20] sm:$0xff] %vm57_vm0, %v198_v57  ;;  %v1164_v60 = vpop.f32.mrb[6].mxu0 }
 0x113   :  { %346 = vst.msk [vmem:[#allocation3 + $0x20] sm:$0xff] %vm57_vm0, %v324_v59  ;;  %v213_v61 = vadd.f32 %v1164_v60, %v1029_v34  ;;  %v1184_v62 = vpop.f32.mrb[6].mxu1  ;;  %v207_v63 = vpop.f32.mrb[7].mxu0 }
 0x114   :  { %v339_v0 = vadd.f32 %v1184_v62, %v1039_v35  ;;  %v208_v2 = vadd.f32 %v1029_v34, %v207_v63  ;;  %v333_v3 = vpop.f32.mrb[7].mxu1 }
 0x115   :  { %223 = vst.msk [vmem:[#allocation2 + $0x38] sm:$0xff] %vm57_vm0, %v213_v61  ;;  %v334_v5 = vadd.f32 %v1039_v35, %v333_v3 }
 0x116   :  { %349 = vst.msk [vmem:[#allocation3 + $0x38] sm:$0xff] %vm57_vm0, %v339_v0  ;;  %222 = vst.msk [vmem:[#allocation2 + $0x30] sm:$0xff] %vm57_vm0, %v208_v2  ;;  %v1195_v7 = vpop.f32.mrb[8].mxu0 }
 0x117   :  { %348 = vst.msk [vmem:[#allocation3 + $0x30] sm:$0xff] %vm57_vm0, %v334_v5  ;;  %v435_v8 = vadd.f32 %v1195_v7, %v1049_v4  ;;  %v1215_v9 = vpop.f32.mrb[8].mxu1  ;;  %v429_v10 = vpop.f32.mrb[9].mxu0 }
 0x118   :  { %v561_v11 = vadd.f32 %v1215_v9, %v1059_v6  ;;  %v430_v12 = vadd.f32 %v1049_v4, %v429_v10  ;;  %v555_v13 = vpop.f32.mrb[9].mxu1 }
 0x119   :  { %469 = vst.msk [vmem:[#allocation4 + $0x8] sm:$0xff] %vm57_vm0, %v435_v8  ;;  %v556_v14 = vadd.f32 %v1059_v6, %v555_v13 }
 0x11a   :  { %595 = vst.msk [vmem:[#allocation5 + $0x8] sm:$0xff] %vm57_vm0, %v561_v11  ;;  %468 = vst.msk [vmem:[#allocation4] sm:$0xff] %vm57_vm0, %v430_v12  ;;  %v1198_v15 = vpop.f32.mrb[10].mxu0 }
 0x11b   :  { %594 = vst.msk [vmem:[#allocation5] sm:$0xff] %vm57_vm0, %v556_v14  ;;  %v445_v16 = vadd.f32 %v1198_v15, %v1049_v4  ;;  %v1218_v17 = vpop.f32.mrb[10].mxu1  ;;  %v439_v18 = vpop.f32.mrb[11].mxu0 }
 0x11c   :  { %v571_v19 = vadd.f32 %v1218_v17, %v1059_v6  ;;  %v440_v20 = vadd.f32 %v1049_v4, %v439_v18  ;;  %v565_v21 = vpop.f32.mrb[11].mxu1 }
 0x11d   :  { %471 = vst.msk [vmem:[#allocation4 + $0x18] sm:$0xff] %vm57_vm0, %v445_v16  ;;  %v566_v22 = vadd.f32 %v1059_v6, %v565_v21 }
 0x11e   :  { %597 = vst.msk [vmem:[#allocation5 + $0x18] sm:$0xff] %vm57_vm0, %v571_v19  ;;  %470 = vst.msk [vmem:[#allocation4 + $0x10] sm:$0xff] %vm57_vm0, %v440_v20  ;;  %v1201_v23 = vpop.f32.mrb[12].mxu0 }
 0x11f   :  { %596 = vst.msk [vmem:[#allocation5 + $0x10] sm:$0xff] %vm57_vm0, %v566_v22  ;;  %v455_v24 = vadd.f32 %v1201_v23, %v1049_v4  ;;  %v1221_v25 = vpop.f32.mrb[12].mxu1  ;;  %v449_v26 = vpop.f32.mrb[13].mxu0 }
 0x120   :  { %v581_v27 = vadd.f32 %v1221_v25, %v1059_v6  ;;  %v450_v28 = vadd.f32 %v1049_v4, %v449_v26  ;;  %v575_v29 = vpop.f32.mrb[13].mxu1 }
 0x121   :  { %473 = vst.msk [vmem:[#allocation4 + $0x28] sm:$0xff] %vm57_vm0, %v455_v24  ;;  %v576_v30 = vadd.f32 %v1059_v6, %v575_v29  ;;  %1026 = sbr.rel (%p1068_p2) target bundleno = 566 (0x236), region = 83 }
 0x122   :  { %599 = vst.msk [vmem:[#allocation5 + $0x28] sm:$0xff] %vm57_vm0, %v581_v27  ;;  %472 = vst.msk [vmem:[#allocation4 + $0x20] sm:$0xff] %vm57_vm0, %v450_v28  ;;  %v1204_v31 = vpop.f32.mrb[14].mxu0 }
 0x123   :  { %598 = vst.msk [vmem:[#allocation5 + $0x20] sm:$0xff] %vm57_vm0, %v576_v30  ;;  %v465_v32 = vadd.f32 %v1204_v31, %v1049_v4  ;;  %v1224_v33 = vpop.f32.mrb[14].mxu1  ;;  %v459_v34 = vpop.f32.mrb[15].mxu0 }
 0x124   :  { %v591_v35 = vadd.f32 %v1224_v33, %v1059_v6  ;;  %v460_v36 = vadd.f32 %v1049_v4, %v459_v34  ;;  %v585_v37 = vpop.f32.mrb[15].mxu1 }
 0x125   :  { %475 = vst.msk [vmem:[#allocation4 + $0x38] sm:$0xff] %vm57_vm0, %v465_v32  ;;  %v586_v38 = vadd.f32 %v1059_v6, %v585_v37 }
 0x126   :  { %601 = vst.msk [vmem:[#allocation5 + $0x38] sm:$0xff] %vm57_vm0, %v591_v35  ;;  %474 = vst.msk [vmem:[#allocation4 + $0x30] sm:$0xff] %vm57_vm0, %v460_v36 }
 0x127   :  { %600 = vst.msk [vmem:[#allocation5 + $0x30] sm:$0xff] %vm57_vm0, %v586_v38 }
 0x128 LB: > { %v615_v39 = vld [vmem:[#allocation12] sm:$0xff]  ;;  %v616_v40 = vld [vmem:[#allocation12 + $0x8] sm:$0xff]  ;;  %v1493_v42 = vmov 0.0|0.0   ;;  %v617_v45 = vld [vmem:[#allocation12 + $0x10] sm:$0xff]  ;;  %vm1494_vm1 = vmmov 0   ;;  %v1495_v50 = vmov 0.0   ;;  %v951_v51 = vstv %s1486_s10  ;;  %s1486_s10 = sphi %s1693_s10, %s607_s10  }
 0x129   : > { %v702_v41 = vld [vmem:[#allocation12 + $0x20] sm:$0xff]  ;;  %1301 = vmatprep.subr.bf16.mxu0 %v1493_v42  ;;  %1307 = vmatprep.subr.bf16.mxu1 %v1493_v42  ;;  %v1302_v43 = vpack.c.bf16 %v616_v40, %v615_v39  ;;  %v703_v44 = vld [vmem:[#allocation12 + $0x28] sm:$0xff]  ;;  %v618_v46 = vld [vmem:[#allocation12 + $0x18] sm:$0xff]  ;;  %v1496_v53 = vmov 0   ;;  %vm952_vm2 = vcmp.lt.s32.totalorder %v951_v51, %v1588_v1  ;;  %s1715_s1 = sshll.u32 %s1486_s10, 3  ;;  %s607_s10 = sadd.s32 1, %s1486_s10  }
 0x12a   : > { %v1308_v47 = vpack.c.bf16 %v703_v44, %v702_v41  ;;  %v704_v48 = vld [vmem:[#allocation12 + $0x30] sm:$0xff]  ;;  %v705_v49 = vld [vmem:[#allocation12 + $0x38] sm:$0xff]  ;;  %1233 = vmatprep.mubr.msk.f32.mxu0 %vm1494_vm1, %v1495_v50  ;;  %1244 = vmatprep.mubr.msk.f32.mxu1 %vm1494_vm1, %v1495_v50  ;;  %v1305_v52 = vpack.c.bf16 %v618_v46, %v617_v45  ;;  %v786_v55 = vld [vmem:[#allocation12 + $0x40] sm:$0xff]  ;;  %v953_v57 = vsel %vm952_vm2, 1, %v1496_v53  ;;  %s613_s11 = scalar_lea.vmem [#allocation2], %s1715_s1  ;;  %s699_s12 = scalar_lea.vmem [#allocation3], %s1715_s1 }
 0x12b   : > { %1303 = vmatpush3.bf16.msra.mxu0 %v1302_v43  ;;  %1345 = vset.pattern.permute.xlu0 %v1496_v53  ;;  %v1311_v54 = vpack.c.bf16 %v705_v49, %v704_v48  ;;  %v787_v56 = vld [vmem:[#allocation12 + $0x48] sm:$0xff]  ;;  %v865_v58 = vld [vmem:[#allocation12 + $0x60] sm:$0xff]  ;;  %v1702_v60 = vld [vmem:[#allocation6] sm:$0xff]  ;;  %s783_s13 = scalar_lea.vmem [#allocation4], %s1715_s1  ;;  %s862_s14 = scalar_lea.vmem [#allocation5], %s1715_s1 }
 0x12c   : > { %1309 = vmatpush3.bf16.msra.mxu1 %v1308_v47  ;;  %1304 = vmatprep.subr.bf16.mxu0 %v1493_v42  ;;  %v866_v59 = vld [vmem:[#allocation12 + $0x68] sm:$0xff]  ;;  %v1314_v61 = vpack.c.bf16 %v787_v56, %v786_v55  ;;  %v788_v63 = vld [vmem:[#allocation12 + $0x50] sm:$0xff]  ;;  %v789_v0 = vld [vmem:[#allocation12 + $0x58] sm:$0xff]  ;;  %s963_s17 = scalar_lea.vmem [#allocation14], %s1715_s1  ;;  %p606_p3 = scmp.ge.s32.totalorder %s607_s10, %s1780_s0 }
 0x12d   : > { %1310 = vmatprep.subr.bf16.mxu1 %v1493_v42  ;;  %955 = vperm.xlu0 %1345, %v953_v57   ;;  %v1320_v62 = vpack.c.bf16 %v866_v59, %v865_v58  ;;  %v867_v2 = vld [vmem:[#allocation12 + $0x70] sm:$0xff]  ;;  %v868_v3 = vld [vmem:[#allocation12 + $0x78] sm:$0xff]  ;;  %v1317_v4 = vpack.c.bf16 %v789_v0, %v788_v63 }
 0x12e   : > { %v1323_v5 = vpack.c.bf16 %v868_v3, %v867_v2  ;;  %v614_v6 = vld [vmem:[%s613_s11] sm:$0xff]  ;;  %v612_v31 = vld [vmem:[#allocation7] sm:$0xff] }
 0x12f   : > { %1306 = vmatpush3.bf16.msra.mxu0 %v1305_v52  ;;  %v700_v7 = vld [vmem:[%s699_s12] sm:$0xff] }
 0x130   : > { %1312 = vmatpush3.bf16.msra.mxu1 %v1311_v54  ;;  %1313 = vmatprep.subr.bf16.mxu0 %v1493_v42  ;;  %v784_v16 = vld [vmem:[%s783_s13] sm:$0xff] }
 0x131   : > { %1319 = vmatprep.subr.bf16.mxu1 %v1493_v42  ;;  %v863_v17 = vld [vmem:[%s862_s14] sm:$0xff] }
 0x132   : > { %1234 = vmatmul.mubr.msk.f32.vlgmr.msra.gmra.mrb[0].mxu0 %vm57_vm0, %v1702_v60 }
 0x133   : > { %1245 = vmatmul.mubr.msk.f32.vlgmr.msra.gmra.mrb[0].mxu1 %vm57_vm0, %v1702_v60  ;;  %1315 = vmatpush3.bf16.msra.mxu0 %v1314_v61 }
 0x134   : > { %1321 = vmatpush3.bf16.msra.mxu1 %v1320_v62  ;;  %1316 = vmatprep.subr.bf16.mxu0 %v1493_v42 }
 0x135   : > { %1322 = vmatprep.subr.bf16.mxu1 %v1493_v42  ;;  %1255 = vmatprep.mubr.msk.f32.mxu0 %vm1494_vm1, %v1495_v50 }
 0x136   : > { %1266 = vmatprep.mubr.msk.f32.mxu1 %vm1494_vm1, %v1495_v50 }
 0x137   : > { %1318 = vmatpush3.bf16.msra.mxu0 %v1317_v4 }
 0x138   : > { %1324 = vmatpush3.bf16.msra.mxu1 %v1323_v5 }
 0x13a   : > { %1256 = vmatmul.mubr.msk.f32.vlgmr.msra.gmra.mrb[2].mxu0 %vm57_vm0, %v1702_v60 }
 0x13b   : > { %1267 = vmatmul.mubr.msk.f32.vlgmr.msra.gmra.mrb[2].mxu1 %vm57_vm0, %v1702_v60 }
 0x1ac   : > { %v956_v34 = vpop.permute.xlu0 %955 }
 0x1ad   : > { %vm957_vm3 = vcmp.eq.s32.totalorder %v956_v34, 1 }
 0x205   : > { %v688_v8 = vpop.f32.mrb[0].mxu0 }
 0x206   : > { %v692_v9 = vadd.f32 %v688_v8, %v614_v6  ;;  %v772_v10 = vpop.f32.mrb[0].mxu1  ;;  %v1235_v11 = vpop.f32.mrb[1].mxu0 }
 0x207   : > { %v776_v12 = vadd.f32 %v772_v10, %v700_v7  ;;  %v1246_v13 = vpop.f32.mrb[1].mxu1 }
 0x208   : > { %v1071_v14 = vmul.f32 -1.442695, %v692_v9 }
 0x209   : > { %v1073_v15 = vmul.f32 -1.442695, %v776_v12 }
 0x20a   : > { %1346 = vpow2.f32 %v1071_v14 }
 0x20b   : > { %1348 = vpow2.f32 %v1073_v15 }
 0x20d   : > { %v856_v18 = vpop.f32.mrb[2].mxu0 }
 0x20e   : > { %v860_v19 = vadd.f32 %v856_v18, %v784_v16  ;;  %v935_v20 = vpop.f32.mrb[2].mxu1  ;;  %v1257_v21 = vpop.f32.mrb[3].mxu0 }
 0x20f   : > { %v939_v22 = vadd.f32 %v935_v20, %v863_v17  ;;  %v1268_v23 = vpop.f32.mrb[3].mxu1 }
 0x211   : > { %v1076_v24 = vmul.f32 -1.442695, %v939_v22 }
 0x213   : > { %1350 = vpow2.f32 %v1076_v24 }
 0x214   : > { %v1347_v25 = vpop.eup %1346  ;;  %1352 = vtanh.f32 %v860_v19 }
 0x215   : > { %v1349_v26 = vpop.eup %1348  ;;  %v696_v27 = vadd.f32 1.0, %v1347_v25 }
 0x216   : > { %v780_v28 = vadd.f32 1.0, %v1349_v26 }
 0x217   : > { %1354 = vrcp.f32 %v696_v27 }
 0x218   : > { %1356 = vrcp.f32 %v780_v28 }
 0x21d   : > { %v1351_v29 = vpop.eup %1350 }
 0x21e   : > { %v1353_v30 = vpop.eup %1352  ;;  %v943_v33 = vadd.f32 1.0, %v1351_v29 }
 0x220   : > { %1358 = vrcp.f32 %v943_v33 }
 0x221   : > { %v1355_v32 = vpop.eup %1354 }
 0x222   : > { %v1357_v35 = vpop.eup %1356  ;;  %v947_v36 = vmul.f32 %v1355_v32, %v1353_v30 }
 0x223   : > { %v946_v37 = vmul.f32 %v1357_v35, %v612_v31 }
 0x225   : > { %v948_v38 = vadd.f32 %v947_v36, %v946_v37 }
 0x227   : > { %1360 = vtanh.f32 %v948_v38  ;;  %v960_v39 = vsel %vm957_vm3, %v948_v38, %v612_v31 }
 0x228   : > { %961 = vst.msk [vmem:[#allocation7] sm:$0xff] %vm57_vm0, %v960_v39 }
 0x22a   : > { %v1359_v40 = vpop.eup %1358 }
 0x22f   :  { %609 = sbr.rel (!%p606_p3) target bundleno = 296 (0x128), region = 89 }
 0x231   : > { %v1361_v41 = vpop.eup %1360 }
 0x232   : > { %v950_v42 = vmul.f32 %v1361_v41, %v1359_v40 }
 0x234   : > { %v958_v43 = vsel %vm957_vm3, %v950_v42, %v1702_v60  ;;  %v962_v44 = vsel %vm957_vm3, %v950_v42, 0.0 }
 0x235   : > { %959 = vst.msk [vmem:[#allocation6] sm:$0xff] %vm57_vm0, %v958_v43  ;;  %964 = vst.msk [vmem:[%s963_s17] sm:$0xff] %vm57_vm0, %v962_v44 }
 0x236 PF:  { %v967_v46 = vld [vmem:[#allocation7] sm:$0xff]  ;;  %s1497_s20 = smov [#allocation15]   ;;  %s1498_s22 = smov [#allocation14]  }
 0x237   :  { %968 = vst.msk [vmem:[#allocation17] sm:$0xff] %vm57_vm0, %v967_v46  ;;  %s987_s21 = sshll.u32 %s1497_s20, 4  ;;  %s974_s23 = sshll.u32 %s1498_s22, 4  ;;  %s988_s21 = int_to_ptr.vmem [resolvable:$true] %s987_s21  ;;  %s1734_s23 = int_to_ptr.vmem [resolvable:$true] %s974_s23 }
 0x238   :  { %s1406_s24 = scalar_lea.vmem %s988_s21, 128  ;;  %p1411_p5 = scmp.lt.s32.totalorder %s988_s21, %s988_s21 }
 0x239   :  { %p1407_p4 = scmp.ne.s32.totalorder %s988_s21, %s1406_s24  ;;  %p1412_p6 = scmp.lt.s32.totalorder %s1406_s24, %s1406_s24 }
 0x23b   :  { %p1413_p7 = por %p1412_p6, %p1411_p5 }
 0x23c   :  { %v965_v45 = vld [vmem:[#allocation6] sm:$0xff] }
 0x23d   :  { %966 = vst.msk [vmem:[#allocation15] sm:$0xff] %vm57_vm0, %v965_v45  ;;  %p1414_p8 = pnand %p1413_p7, %p1407_p4 }
 0x23f   :  { %1417 = shalt.err (!%p1414_p8)
}
 0x240   :  { %s1418_s2 = scalar_lea.hbm %s1787_s7, 128 }
 0x241   :  { %p1419_p9 = scmp.ne.s32.totalorder %s1787_s7, %s1418_s2  ;;  %p1422_p10 = scmp.lt.u32.totalorder %s1418_s2, %s1787_s7 }
 0x243   :  { %p1424_p11 = pnand %p1422_p10, %p1419_p9 }
 0x245   :  { %1427 = shalt.err (!%p1424_p11)
}
 0x246   :  { %990 = dma.vmem_to_hbm [thread:$0]  %s988_s21, 128, %s1787_s7, [#allocation16]  }
 0x247   :  { %s1428_s30 = scalar_lea.vmem %s1734_s23, 1024  ;;  %p1433_p13 = scmp.lt.s32.totalorder %s1734_s23, %s1734_s23 }
 0x248   :  { %p1429_p12 = scmp.ne.s32.totalorder %s1734_s23, %s1428_s30  ;;  %p1434_p0 = scmp.lt.s32.totalorder %s1428_s30, %s1428_s30 }
 0x24a   :  { %p1435_p1 = por %p1434_p0, %p1433_p13 }
 0x24c   :  { %p1436_p2 = pnand %p1435_p1, %p1429_p12 }
 0x24e   :  { %1439 = shalt.err (!%p1436_p2)
}
 0x24f   :  { %s1440_s10 = scalar_lea.hbm %s1786_s6, 1024 }
 0x250   :  { %p1441_p3 = scmp.ne.s32.totalorder %s1786_s6, %s1440_s10  ;;  %p1444_p4 = scmp.lt.u32.totalorder %s1440_s10, %s1786_s6 }
 0x252   :  { %p1446_p5 = pnand %p1444_p4, %p1441_p3 }
 0x254   :  { %1449 = shalt.err (!%p1446_p5)
}
 0x255   :  { %980 = dma.vmem_to_hbm [thread:$0]  %s1734_s23, 1024, %s1786_s6, [#allocation11], %s1489_s15, %s1489_s15, %s1490_s16  }
 0x256   :  { %s1499_s17 = smov [#allocation17]  }
 0x257   :  { %s997_s18 = sshll.u32 %s1499_s17, 4  ;;  %s998_s18 = int_to_ptr.vmem [resolvable:$true] %s997_s18 }
 0x258   :  { %s1450_s19 = scalar_lea.vmem %s998_s18, 128  ;;  %p1455_p7 = scmp.lt.s32.totalorder %s998_s18, %s998_s18 }
 0x259   :  { %p1451_p6 = scmp.ne.s32.totalorder %s998_s18, %s1450_s19  ;;  %p1456_p8 = scmp.lt.s32.totalorder %s1450_s19, %s1450_s19 }
 0x25b   :  { %p1457_p9 = por %p1456_p8, %p1455_p7 }
 0x25d   :  { %p1458_p10 = pnand %p1457_p9, %p1451_p6 }
 0x25f   :  { %1461 = shalt.err (!%p1458_p10)
}
 0x260   :  { %s1462_s22 = scalar_lea.hbm %s1788_s8, 128 }
 0x261   :  { %p1463_p11 = scmp.ne.s32.totalorder %s1788_s8, %s1462_s22  ;;  %p1466_p12 = scmp.lt.u32.totalorder %s1462_s22, %s1788_s8 }
 0x263   :  { %p1468_p13 = pnand %p1466_p12, %p1463_p11 }
 0x265   :  { %1471 = shalt.err (!%p1468_p13)
}
 0x266   :  { %1000 = dma.vmem_to_hbm [thread:$0]  %s998_s18, 128, %s1788_s8, [#allocation16]  }
 0x267   :  { %1480 = dma.done.wait [#allocation11], 1024  }
 0x268   :  { %1481 = vsyncadd [#allocation11], 4294966272 }
 0x269   :  { %1482 = dma.done.wait [#allocation16], 256  }
 0x26a   :  { %1483 = vsyncadd [#allocation16], 4294967040 }
 0x26b   :  { %1010 = vsyncpa [#allocation10], 1 }
 0x26c   :  { %1011 = vsyncpa [#allocation13], 1 }
 0x26d   :  { %1012 = vsyncpa [#allocation11], 1 }
 0x26e   :  { %1013 = vsyncpa [#allocation16], 1 }

</bundles_post_ra>
